<compile_context>
chip_gen: v7x
topology: tpu7x:2x2x1
jax: 0.10.0
libtpu: 0.0.40
codegen_flags: <defaults>
</compile_context>

<pallas_src>
import jax
import jax.numpy as jnp
from jax.experimental import pallas as pl
from jax.experimental.pallas import tpu as pltpu


def _ann_kernel(x_ref, w1_ref, b1_ref, w2_ref, b2_ref, w3_ref, b3_ref,
                w4_ref, b4_ref, o_ref):
    # bf16 operands feed the MXU; accumulation is f32 (preferred_element_type).
    x = x_ref[...].astype(jnp.bfloat16)

    # Linear(input_size, 64) + ReLU   (Dropout = identity in eval)
    h1 = jnp.maximum(
        jnp.dot(x, w1_ref[...], preferred_element_type=jnp.float32) + b1_ref[...],
        0.0).astype(jnp.bfloat16)

    # Linear(64, 128) + ReLU
    h2 = jnp.maximum(
        jnp.dot(h1, w2_ref[...], preferred_element_type=jnp.float32) + b2_ref[...],
        0.0).astype(jnp.bfloat16)

    # Linear(128, 128) + ReLU
    h3 = jnp.maximum(
        jnp.dot(h2, w3_ref[...], preferred_element_type=jnp.float32) + b3_ref[...],
        0.0).astype(jnp.bfloat16)

    # Linear(128, output_size) + Softmax(dim=1), all in f32, exact normalization.
    logits = jnp.dot(h3, w4_ref[...], preferred_element_type=jnp.float32) + b4_ref[...]
    m = jnp.max(logits, axis=-1, keepdims=True)
    e = jnp.exp(logits - m)
    denom = jnp.sum(e, axis=-1, keepdims=True)
    o_ref[...] = (e / denom).astype(o_ref.dtype)


def prepare_params(params):
    """One-time parameter prep (hoisted out of the hot path): bf16 weights, f32 biases."""
    w1, b1, w2, b2, w3, b3, w4, b4 = params
    return (w1.astype(jnp.bfloat16), b1,
            w2.astype(jnp.bfloat16), b2,
            w3.astype(jnp.bfloat16), b3,
            w4.astype(jnp.bfloat16), b4)


def ann_forward(x, prepped_params, *, tile_b=2048):
    """Fused forward pass of ANNModel.

    x: (B, input_size) float32.  prepped_params: output of prepare_params().
    Returns (B, output_size) float32 softmax probabilities.
    """
    w1, b1, w2, b2, w3, b3, w4, b4 = prepped_params
    B, in_size = x.shape
    out_size = w4.shape[1]

    # Batch tile: multiple of 8 sublanes; capped at ceil(B/2) (rounded up to 8) so the
    # grid has >= 2 steps whenever there is enough work for v7x's two TensorCores.
    b8 = ((B + 7) // 8) * 8
    half = (((b8 + 1) // 2) + 7) // 8 * 8
    tb = max(8, min(tile_b, half))
    Bp = ((B + tb - 1) // tb) * tb
    xp = jnp.pad(x, ((0, Bp - B), (0, 0))) if Bp != B else x
    grid = (Bp // tb,)

    def wspec(a):
        return pl.BlockSpec(a.shape, lambda i: (0,) * a.ndim)

    flops = 2 * Bp * (in_size * 64 + 64 * 128 + 128 * 128 + 128 * out_size)
    bytes_accessed = (xp.size * 4 + Bp * out_size * 4
                      + sum(int(w.size) * 2 for w in (w1, w2, w3, w4))
                      + sum(int(b.size) * 4 for b in (b1, b2, b3, b4)))
    cost = pl.CostEstimate(flops=flops, transcendentals=Bp * out_size,
                           bytes_accessed=bytes_accessed)

    out = pl.pallas_call(
        _ann_kernel,
        out_shape=jax.ShapeDtypeStruct((Bp, out_size), jnp.float32),
        grid_spec=pl.GridSpec(
            grid=grid,
            in_specs=[
                pl.BlockSpec((tb, in_size), lambda i: (i, 0)),   # x tile marches over batch
                wspec(w1), wspec(b1),                            # weights/biases stay resident
                wspec(w2), wspec(b2),
                wspec(w3), wspec(b3),
                wspec(w4), wspec(b4),
            ],
            out_specs=pl.BlockSpec((tb, out_size), lambda i: (i, 0)),
        ),
        compiler_params=pltpu.CompilerParams(
            dimension_semantics=("parallel",),          # batch axis shards across v7x's 2 TCs
            vmem_limit_bytes=32 * 1024 * 1024,
        ),
        cost_estimate=cost,
    )(xp, w1, b1, w2, b2, w3, b3, w4, b4)

    return out[:B] if Bp != B else out


def init_params(key, input_size, output_size):
    """Deterministic synthetic parameters matching nn.Linear shapes (stored as (in, out))."""
    dims = [(input_size, 64), (64, 128), (128, 128), (128, output_size)]
    params = []
    for (fan_in, fan_out) in dims:
        key, kw, kb = jax.random.split(key, 3)
        bound = 1.0 / jnp.sqrt(fan_in)
        w = jax.random.uniform(kw, (fan_in, fan_out), jnp.float32, -bound, bound)
        b = jax.random.uniform(kb, (1, fan_out), jnp.float32, -bound, bound)
        params += [w, b]
    return tuple(params)


def _reference_forward(x, params):
    """Pure-JAX reference (f32) for a correctness sanity check."""
    w1, b1, w2, b2, w3, b3, w4, b4 = params
    h = jnp.maximum(x @ w1 + b1, 0.0)
    h = jnp.maximum(h @ w2 + b2, 0.0)
    h = jnp.maximum(h @ w3 + b3, 0.0)
    return jax.nn.softmax(h @ w4 + b4, axis=1)


if __name__ == "__main__":
    input_size = 16   # X_train.shape[1]
    output_size = 4   # y_train.shape[1]
    batch = 8

    key = jax.random.PRNGKey(0)
    key, kx = jax.random.split(key)
    x = jax.random.normal(kx, (batch, input_size), jnp.float32)
    params = init_params(key, input_size, output_size)

    # One-time weight prep (bf16 casts hoisted out of the forward hot path).
    prepped = prepare_params(params)

    out = jax.block_until_ready(ann_forward(x, prepped))

    # sanity: shape, softmax rows sum to 1, and close to the f32 reference
    assert out.shape == (batch, output_size)
    assert bool(jnp.allclose(jnp.sum(out, axis=1), 1.0, atol=1e-3)), "rows do not sum to 1"
    ref = _reference_forward(x, params)
    assert bool(jnp.allclose(out, ref, atol=2e-2)), "mismatch vs reference"

    print("KERNEL_OK")
</pallas_src>

<mosaic_0001>
module attributes {stable_mosaic.version = 11 : i64} {
  func.func @_ann_kernel(%arg0: i32, %arg1: memref<8x16xf32, #tpu.memory_space<vmem>>, %arg2: memref<16x64xbf16, #tpu.memory_space<vmem>>, %arg3: memref<1x64xf32, #tpu.memory_space<vmem>>, %arg4: memref<64x128xbf16, #tpu.memory_space<vmem>>, %arg5: memref<1x128xf32, #tpu.memory_space<vmem>>, %arg6: memref<128x128xbf16, #tpu.memory_space<vmem>>, %arg7: memref<1x128xf32, #tpu.memory_space<vmem>>, %arg8: memref<128x4xbf16, #tpu.memory_space<vmem>>, %arg9: memref<1x4xf32, #tpu.memory_space<vmem>>, %arg10: memref<8x4xf32, #tpu.memory_space<vmem>>) attributes {dimension_semantics = [#tpu.dimension_semantics<parallel>], iteration_bounds = array<i64: 1>, scalar_prefetch = 0 : i64, scratch_operands = 0 : i64, tpu.core_type = #tpu.core_type<tc>, window_params = [{transform_indices = @transform_0, window_bounds = array<i64: 8, 16>}, {pipeline_mode = #tpu.pipeline_mode<synchronous>, transform_indices = @transform_1, window_bounds = array<i64: 16, 64>}, {pipeline_mode = #tpu.pipeline_mode<synchronous>, transform_indices = @transform_2, window_bounds = array<i64: 1, 64>}, {pipeline_mode = #tpu.pipeline_mode<synchronous>, transform_indices = @transform_3, window_bounds = array<i64: 64, 128>}, {pipeline_mode = #tpu.pipeline_mode<synchronous>, transform_indices = @transform_4, window_bounds = array<i64: 1, 128>}, {pipeline_mode = #tpu.pipeline_mode<synchronous>, transform_indices = @transform_5, window_bounds = array<i64: 128, 128>}, {pipeline_mode = #tpu.pipeline_mode<synchronous>, transform_indices = @transform_6, window_bounds = array<i64: 1, 128>}, {pipeline_mode = #tpu.pipeline_mode<synchronous>, transform_indices = @transform_7, window_bounds = array<i64: 128, 4>}, {pipeline_mode = #tpu.pipeline_mode<synchronous>, transform_indices = @transform_8, window_bounds = array<i64: 1, 4>}, {transform_indices = @transform_9, window_bounds = array<i64: 8, 4>}]} {
    %c0 = arith.constant 0 : index
    %c0_0 = arith.constant 0 : index
    %0 = vector.load %arg1[%c0, %c0_0] : memref<8x16xf32, #tpu.memory_space<vmem>>, vector<8x16xf32>
    %1 = arith.truncf %0 : vector<8x16xf32> to vector<8x16xbf16>
    %c0_1 = arith.constant 0 : index
    %c0_2 = arith.constant 0 : index
    %2 = vector.load %arg2[%c0_1, %c0_2] : memref<16x64xbf16, #tpu.memory_space<vmem>>, vector<16x64xbf16>
    %cst = arith.constant dense<0.000000e+00> : vector<8x64xf32>
    %3 = tpu.matmul %1, %2, %cst {dimension_numbers = #tpu.dot_dimension_numbers<[1], [0], [0], [1], [0, 0, 1, 1], [], []>} : vector<8x16xbf16>, vector<16x64xbf16>, vector<8x64xf32> -> vector<8x64xf32>
    %c0_3 = arith.constant 0 : index
    %c0_4 = arith.constant 0 : index
    %4 = vector.load %arg3[%c0_3, %c0_4] : memref<1x64xf32, #tpu.memory_space<vmem>>, vector<1x64xf32>
    %5 = vector.broadcast %4 : vector<1x64xf32> to vector<8x64xf32>
    %6 = arith.addf %3, %5 : vector<8x64xf32>
    %cst_5 = arith.constant 0.000000e+00 : f32
    %7 = vector.broadcast %cst_5 : f32 to vector<8x64xf32>
    %8 = arith.maximumf %6, %7 : vector<8x64xf32>
    %9 = arith.truncf %8 : vector<8x64xf32> to vector<8x64xbf16>
    %c0_6 = arith.constant 0 : index
    %c0_7 = arith.constant 0 : index
    %10 = vector.load %arg4[%c0_6, %c0_7] : memref<64x128xbf16, #tpu.memory_space<vmem>>, vector<64x128xbf16>
    %cst_8 = arith.constant dense<0.000000e+00> : vector<8x128xf32>
    %11 = tpu.matmul %9, %10, %cst_8 {dimension_numbers = #tpu.dot_dimension_numbers<[1], [0], [0], [1], [0, 0, 1, 1], [], []>} : vector<8x64xbf16>, vector<64x128xbf16>, vector<8x128xf32> -> vector<8x128xf32>
    %c0_9 = arith.constant 0 : index
    %c0_10 = arith.constant 0 : index
    %12 = vector.load %arg5[%c0_9, %c0_10] : memref<1x128xf32, #tpu.memory_space<vmem>>, vector<1x128xf32>
    %13 = vector.broadcast %12 : vector<1x128xf32> to vector<8x128xf32>
    %14 = arith.addf %11, %13 : vector<8x128xf32>
    %cst_11 = arith.constant 0.000000e+00 : f32
    %15 = vector.broadcast %cst_11 : f32 to vector<8x128xf32>
    %16 = arith.maximumf %14, %15 : vector<8x128xf32>
    %17 = arith.truncf %16 : vector<8x128xf32> to vector<8x128xbf16>
    %c0_12 = arith.constant 0 : index
    %c0_13 = arith.constant 0 : index
    %18 = vector.load %arg6[%c0_12, %c0_13] : memref<128x128xbf16, #tpu.memory_space<vmem>>, vector<128x128xbf16>
    %cst_14 = arith.constant dense<0.000000e+00> : vector<8x128xf32>
    %19 = tpu.matmul %17, %18, %cst_14 {dimension_numbers = #tpu.dot_dimension_numbers<[1], [0], [0], [1], [0, 0, 1, 1], [], []>} : vector<8x128xbf16>, vector<128x128xbf16>, vector<8x128xf32> -> vector<8x128xf32>
    %c0_15 = arith.constant 0 : index
    %c0_16 = arith.constant 0 : index
    %20 = vector.load %arg7[%c0_15, %c0_16] : memref<1x128xf32, #tpu.memory_space<vmem>>, vector<1x128xf32>
    %21 = vector.broadcast %20 : vector<1x128xf32> to vector<8x128xf32>
    %22 = arith.addf %19, %21 : vector<8x128xf32>
    %cst_17 = arith.constant 0.000000e+00 : f32
    %23 = vector.broadcast %cst_17 : f32 to vector<8x128xf32>
    %24 = arith.maximumf %22, %23 : vector<8x128xf32>
    %25 = arith.truncf %24 : vector<8x128xf32> to vector<8x128xbf16>
    %c0_18 = arith.constant 0 : index
    %c0_19 = arith.constant 0 : index
    %26 = vector.load %arg8[%c0_18, %c0_19] : memref<128x4xbf16, #tpu.memory_space<vmem>>, vector<128x4xbf16>
    %cst_20 = arith.constant dense<0.000000e+00> : vector<8x4xf32>
    %27 = tpu.matmul %25, %26, %cst_20 {dimension_numbers = #tpu.dot_dimension_numbers<[1], [0], [0], [1], [0, 0, 1, 1], [], []>} : vector<8x128xbf16>, vector<128x4xbf16>, vector<8x4xf32> -> vector<8x4xf32>
    %c0_21 = arith.constant 0 : index
    %c0_22 = arith.constant 0 : index
    %28 = vector.load %arg9[%c0_21, %c0_22] : memref<1x4xf32, #tpu.memory_space<vmem>>, vector<1x4xf32>
    %29 = vector.broadcast %28 : vector<1x4xf32> to vector<8x4xf32>
    %30 = arith.addf %27, %29 : vector<8x4xf32>
    %cst_23 = arith.constant dense<0xFF800000> : vector<8xf32>
    %31 = vector.multi_reduction <maximumf>, %30, %cst_23 [1] : vector<8x4xf32> to vector<8xf32>
    %32 = vector.shape_cast %31 : vector<8xf32> to vector<8x1xf32>
    %33 = vector.broadcast %32 : vector<8x1xf32> to vector<8x4xf32>
    %34 = arith.subf %30, %33 : vector<8x4xf32>
    %35 = math.exp %34 : vector<8x4xf32>
    %cst_24 = arith.constant dense<0.000000e+00> : vector<8xf32>
    %36 = vector.multi_reduction <add>, %35, %cst_24 [1] : vector<8x4xf32> to vector<8xf32>
    %37 = vector.shape_cast %36 : vector<8xf32> to vector<8x1xf32>
    %38 = vector.broadcast %37 : vector<8x1xf32> to vector<8x4xf32>
    %39 = arith.divf %35, %38 : vector<8x4xf32>
    %c0_25 = arith.constant 0 : index
    %c0_26 = arith.constant 0 : index
    %40 = vector.load %arg10[%c0_25, %c0_26] : memref<8x4xf32, #tpu.memory_space<vmem>>, vector<8x4xf32>
    tpu.vector_store %arg10[%c0_25, %c0_26], %39 {strides = array<i32>} : memref<8x4xf32, #tpu.memory_space<vmem>>, vector<8x4xf32>,
    return
  }
  func.func @transform_0(%arg0: i32) -> (i32, i32) {
    %c0_i32 = arith.constant 0 : i32
    %c0_i32_0 = arith.constant 0 : i32
    return %arg0, %c0_i32 : i32, i32
  }
  func.func @transform_1(%arg0: i32) -> (i32, i32) {
    %c0_i32 = arith.constant 0 : i32
    %c0_i32_0 = arith.constant 0 : i32
    %c0_i32_1 = arith.constant 0 : i32
    return %c0_i32, %c0_i32_0 : i32, i32
  }
  func.func @transform_2(%arg0: i32) -> (i32, i32) {
    %c0_i32 = arith.constant 0 : i32
    %c0_i32_0 = arith.constant 0 : i32
    %c0_i32_1 = arith.constant 0 : i32
    return %c0_i32, %c0_i32_0 : i32, i32
  }
  func.func @transform_3(%arg0: i32) -> (i32, i32) {
    %c0_i32 = arith.constant 0 : i32
    %c0_i32_0 = arith.constant 0 : i32
    %c0_i32_1 = arith.constant 0 : i32
    return %c0_i32, %c0_i32_0 : i32, i32
  }
  func.func @transform_4(%arg0: i32) -> (i32, i32) {
    %c0_i32 = arith.constant 0 : i32
    %c0_i32_0 = arith.constant 0 : i32
    %c0_i32_1 = arith.constant 0 : i32
    return %c0_i32, %c0_i32_0 : i32, i32
  }
  func.func @transform_5(%arg0: i32) -> (i32, i32) {
    %c0_i32 = arith.constant 0 : i32
    %c0_i32_0 = arith.constant 0 : i32
    %c0_i32_1 = arith.constant 0 : i32
    return %c0_i32, %c0_i32_0 : i32, i32
  }
  func.func @transform_6(%arg0: i32) -> (i32, i32) {
    %c0_i32 = arith.constant 0 : i32
    %c0_i32_0 = arith.constant 0 : i32
    %c0_i32_1 = arith.constant 0 : i32
    return %c0_i32, %c0_i32_0 : i32, i32
  }
  func.func @transform_7(%arg0: i32) -> (i32, i32) {
    %c0_i32 = arith.constant 0 : i32
    %c0_i32_0 = arith.constant 0 : i32
    %c0_i32_1 = arith.constant 0 : i32
    return %c0_i32, %c0_i32_0 : i32, i32
  }
  func.func @transform_8(%arg0: i32) -> (i32, i32) {
    %c0_i32 = arith.constant 0 : i32
    %c0_i32_0 = arith.constant 0 : i32
    %c0_i32_1 = arith.constant 0 : i32
    return %c0_i32, %c0_i32_0 : i32, i32
  }
  func.func @transform_9(%arg0: i32) -> (i32, i32) {
    %c0_i32 = arith.constant 0 : i32
    %c0_i32_0 = arith.constant 0 : i32
    return %arg0, %c0_i32 : i32, i32
  }
}

</mosaic_0001>

<bundles_post_ra>
// kernel: tpu_custom_call.1
= control target key start
LH: loop header
LB: loop body
LE: loop exit
PB: predicated region body
PF: predicated region fallthrough
CT: control target
= control target key end

     0   :  { %14 = vsyncpa [#allocation3], 0  ;;  %s601_s30 = smov [#allocation2]   ;;  %s769_s0 = inlined_call_operand.vmem [shape: f32[8,16], index: 0, kind: input, shape index: {}]   ;;  %s770_s1 = inlined_call_operand.vmem [shape: bf16[16,64], index: 1, kind: input, shape index: {}]   ;;  %s771_s2 = inlined_call_operand.vmem [shape: f32[1,64], index: 2, kind: input, shape index: {}]   ;;  %s772_s3 = inlined_call_operand.hbm [shape: bf16[64,128], index: 3, kind: input, shape index: {}]   ;;  %s773_s4 = inlined_call_operand.vmem [shape: f32[1,128], index: 4, kind: input, shape index: {}]   ;;  %s774_s5 = inlined_call_operand.vmem [shape: bf16[128,128], index: 5, kind: input, shape index: {}]   ;;  %s775_s6 = inlined_call_operand.vmem [shape: f32[1,128], index: 6, kind: input, shape index: {}]   ;;  %s776_s7 = inlined_call_operand.vmem [shape: bf16[128,4], index: 7, kind: input, shape index: {}]   ;;  %s777_s8 = inlined_call_operand.vmem [shape: f32[1,4], index: 8, kind: input, shape index: {}]   ;;  %s778_s9 = inlined_call_operand.vmem [shape: f32[8,4], index: 9, kind: output, shape index: {}]  }
   0x1   :  { %s26_s10 = sshll.u32 %s601_s30, 4  ;;  %s577_s13 = scalar_lea.hbm %s772_s3, 512  ;;  %s27_s10 = int_to_ptr.vmem [resolvable:$true] %s26_s10 }
   0x2   :  { %p578_p0 = scmp.ne.s32.totalorder %s772_s3, %s577_s13  ;;  %p581_p1 = scmp.lt.u32.totalorder %s577_s13, %s772_s3 }
   0x4   :  { %p583_p2 = pnand %p581_p1, %p578_p0 }
   0x6   :  { %586 = shalt.err (!%p583_p2)
}
   0x7   :  { %s587_s18 = scalar_lea.vmem %s27_s10, 512  ;;  %p592_p4 = scmp.lt.s32.totalorder %s27_s10, %s27_s10 }
   0x8   :  { %p588_p3 = scmp.ne.s32.totalorder %s27_s10, %s587_s18  ;;  %p593_p5 = scmp.lt.s32.totalorder %s587_s18, %s587_s18 }
   0xa   :  { %p594_p6 = por %p593_p5, %p592_p4 }
   0xc   :  { %p595_p7 = pnand %p594_p6, %p588_p3 }
   0xe   :  { %598 = shalt.err (!%p595_p7)
}
   0xf   :  { %s602_s19 = smov 64   ;;  %s603_s20 = smov 4  }
  0x10   :  { %32 = dma.hbm_to_vmem [thread:$0]  %s772_s3, 512, %s27_s10, [#allocation3], %s602_s19, %s602_s19, %s603_s20  }
  0x11   :  { %599 = dma.done.wait [#allocation3], 512  }
  0x12   :  { %600 = vsyncadd [#allocation3], 4294966784  ;;  %v604_v0 = vmov 0.0   ;;  %vm605_vm0 = vmmov 0   ;;  %v552_v1 = vld [vmem:[%s770_s1] sm:$0xff]   ;;  %vm64_vm1 = vcmask 130048  }
  0x13   :  { %489 = vmatprep.subr.bf16.mxu0 %v604_v0  ;;  %491 = vmatprep.mubr.msk.bf16.mxu0 %vm605_vm0, %v604_v0  ;;  %v47_v2 = vld [vmem:[%s769_s0] sm:$0xff]  ;;  %v554_v5 = vld [vmem:[#allocation2 + $0x8] sm:$0xff]   ;;  %v555_v6 = vld [vmem:[#allocation2 + $0x10] sm:$0xff]   ;;  %vm149_vm2 = vcmask 523264   ;;  %vm419_vm3 = vcmask 31744  }
  0x14   :  { %495 = vmatprep.subr.bf16.mxu1 %v604_v0  ;;  %503 = vmatprep.mubr.msk.bf16.mxu1 %vm605_vm0, %v604_v0  ;;  %v48_v3 = vpack.c.bf16 %v47_v2, %v47_v2  ;;  %v553_v4 = vld [vmem:[#allocation2] sm:$0xff]   ;;  %v556_v7 = vld [vmem:[#allocation2 + $0x18] sm:$0xff]   ;;  %v558_v9 = vld [vmem:[%s774_s5 + $0x8] sm:$0xff]  }
  0x15   :  { %490 = vmatpush3.bf16.msra.mxu0 %v552_v1  ;;  %496 = vmatpush3.bf16.msra.mxu1 %v553_v4  ;;  %v557_v8 = vld [vmem:[%s774_s5] sm:$0xff]   ;;  %v559_v10 = vld [vmem:[%s774_s5 + $0x10] sm:$0xff]   ;;  %v560_v11 = vld [vmem:[%s774_s5 + $0x18] sm:$0xff]  }
  0x16   :  { %507 = vmatprep.subr.bf16.mxu0 %v604_v0  ;;  %497 = vmatprep.subr.bf16.mxu1 %v604_v0  ;;  %v561_v12 = vld [vmem:[%s774_s5 + $0x20] sm:$0xff]   ;;  %v562_v13 = vld [vmem:[%s774_s5 + $0x28] sm:$0xff]   ;;  %v563_v22 = vld [vmem:[%s774_s5 + $0x30] sm:$0xff]  }
  0x17   :  { %v437_v14 = vld [vmem:[%s771_s2] ss:$0 sm:$0xff]  ;;  %v564_v23 = vld [vmem:[%s774_s5 + $0x38] sm:$0xff]   ;;  %v566_v25 = vld [vmem:[%s776_s7 + $0x8] sm:$0xff]  }
  0x18   :  { %492 = vmatmul.mubr.msk.bf16.vlgmr.msra.gmra.mrb[0].mxu0 %vm64_vm1, %v48_v3  ;;  %v565_v24 = vld [vmem:[%s776_s7] sm:$0xff]   ;;  %v567_v26 = vld [vmem:[%s776_s7 + $0x10] sm:$0xff]   ;;  %v568_v27 = vld [vmem:[%s776_s7 + $0x18] sm:$0xff]  }
  0x19   :  { %523 = vmatprep.mubr.msk.bf16.mxu0 %vm605_vm0, %v604_v0  ;;  %498 = vmatpush3.bf16.msra.mxu1 %v554_v5  ;;  %v569_v28 = vld [vmem:[%s776_s7 + $0x20] sm:$0xff]   ;;  %v570_v29 = vld [vmem:[%s776_s7 + $0x28] sm:$0xff]   ;;  %v571_v38 = vld [vmem:[%s776_s7 + $0x30] sm:$0xff]  }
  0x1a   :  { %499 = vmatprep.subr.bf16.mxu1 %v604_v0  ;;  %508 = vmatpush3.bf16.msra.mxu0 %v557_v8  ;;  %v440_v30 = vld [vmem:[%s773_s4] ss:$0 sm:$0xff]  ;;  %v572_v39 = vld [vmem:[%s776_s7 + $0x38] sm:$0xff]  }
  0x1b   :  { %509 = vmatprep.subr.bf16.mxu0 %v604_v0  ;;  %v446_v40 = vld [vmem:[%s775_s6] ss:$0 sm:$0xff] }
  0x1c   :  { %v455_v48 = vld [vmem:[%s777_s8] ss:$0 sm:$0xff] }
  0x1d   :  { %500 = vmatpush3.bf16.msra.mxu1 %v555_v6 }
  0x1e   :  { %501 = vmatprep.subr.bf16.mxu1 %v604_v0  ;;  %510 = vmatpush3.bf16.msra.mxu0 %v558_v9 }
  0x1f   :  { %511 = vmatprep.subr.bf16.mxu0 %v604_v0 }
  0x21   :  { %502 = vmatpush3.bf16.msra.mxu1 %v556_v7 }
  0x22   :  { %527 = vmatprep.subr.bf16.mxu1 %v604_v0  ;;  %512 = vmatpush3.bf16.msra.mxu0 %v559_v10 }
  0x23   :  { %513 = vmatprep.subr.bf16.mxu0 %v604_v0 }
  0x26   :  { %514 = vmatpush3.bf16.msra.mxu0 %v560_v11 }
  0x27   :  { %515 = vmatprep.subr.bf16.mxu0 %v604_v0 }
  0x2a   :  { %516 = vmatpush3.bf16.msra.mxu0 %v561_v12 }
  0x2b   :  { %517 = vmatprep.subr.bf16.mxu0 %v604_v0 }
  0x2e   :  { %518 = vmatpush3.bf16.msra.mxu0 %v562_v13 }
  0x2f   :  { %519 = vmatprep.subr.bf16.mxu0 %v604_v0 }
  0x32   :  { %520 = vmatpush3.bf16.msra.mxu0 %v563_v22 }
  0x33   :  { %521 = vmatprep.subr.bf16.mxu0 %v604_v0 }
  0x36   :  { %522 = vmatpush3.bf16.msra.mxu0 %v564_v23 }
  0xeb   :  { %v102_v15 = vpop.f32.mrb[0].mxu0 }
  0xec   :  { %v103_v16 = vadd.f32 %v437_v14, %v102_v15  ;;  %v493_v17 = vpop.f32.mrb[1].mxu0 }
  0xed   :  { %v105_v18 = vpop.f32.mrb[2].mxu0 }
  0xee   :  { %v108_v19 = vmax.f32 %v103_v16, 0.0  ;;  %v494_v20 = vpop.f32.mrb[3].mxu0 }
  0xf0   :  { %v109_v21 = vpack.c.bf16 %v108_v19, %v108_v19 }
  0xf2   :  { %504 = vmatmul.mubr.msk.bf16.vlgmr.msra.gmra.mrb[0].mxu1 %vm149_vm2, %v109_v21 }
  0xf3   :  { %543 = vmatprep.mubr.msk.bf16.mxu1 %vm605_vm0, %v604_v0  ;;  %528 = vmatpush3.bf16.msra.mxu1 %v565_v24 }
  0xf4   :  { %529 = vmatprep.subr.bf16.mxu1 %v604_v0 }
  0xf7   :  { %530 = vmatpush3.bf16.msra.mxu1 %v566_v25 }
  0xf8   :  { %531 = vmatprep.subr.bf16.mxu1 %v604_v0 }
  0xfb   :  { %532 = vmatpush3.bf16.msra.mxu1 %v567_v26 }
  0xfc   :  { %533 = vmatprep.subr.bf16.mxu1 %v604_v0 }
  0xff   :  { %534 = vmatpush3.bf16.msra.mxu1 %v568_v27 }
 0x100   :  { %535 = vmatprep.subr.bf16.mxu1 %v604_v0 }
 0x103   :  { %536 = vmatpush3.bf16.msra.mxu1 %v569_v28 }
 0x104   :  { %537 = vmatprep.subr.bf16.mxu1 %v604_v0 }
 0x107   :  { %538 = vmatpush3.bf16.msra.mxu1 %v570_v29 }
 0x108   :  { %539 = vmatprep.subr.bf16.mxu1 %v604_v0 }
 0x10b   :  { %540 = vmatpush3.bf16.msra.mxu1 %v571_v38 }
 0x10c   :  { %541 = vmatprep.subr.bf16.mxu1 %v604_v0 }
 0x10f   :  { %542 = vmatpush3.bf16.msra.mxu1 %v572_v39 }
 0x1c5   :  { %v187_v31 = vpop.f32.mrb[0].mxu1 }
 0x1c6   :  { %v188_v32 = vadd.f32 %v440_v30, %v187_v31  ;;  %v505_v33 = vpop.f32.mrb[1].mxu1 }
 0x1c7   :  { %v190_v34 = vpop.f32.mrb[2].mxu1 }
 0x1c8   :  { %v193_v35 = vmax.f32 %v188_v32, 0.0  ;;  %v506_v36 = vpop.f32.mrb[3].mxu1 }
 0x1ca   :  { %v194_v37 = vpack.c.bf16 %v193_v35, %v193_v35 }
 0x1cc   :  { %524 = vmatmul.mubr.bf16.vlgmr.msra.gmra.mrb[4].mxu0 %v194_v37 }
 0x29f   :  { %v300_v41 = vpop.f32.mrb[4].mxu0 }
 0x2a0   :  { %v301_v42 = vadd.f32 %v446_v40, %v300_v41  ;;  %v525_v43 = vpop.f32.mrb[5].mxu0 }
 0x2a1   :  { %v303_v44 = vpop.f32.mrb[6].mxu0 }
 0x2a2   :  { %v306_v45 = vmax.f32 %v301_v42, 0.0  ;;  %v526_v46 = vpop.f32.mrb[7].mxu0 }
 0x2a4   :  { %v307_v47 = vpack.c.bf16 %v306_v45, %v306_v45 }
 0x2a6   :  { %544 = vmatmul.mubr.bf16.vlgmr.msra.gmra.mrb[4].mxu1 %v307_v47 }
 0x379   :  { %v413_v49 = vpop.f32.mrb[4].mxu1 }
 0x37a   :  { %v414_v50 = vadd.f32 %v455_v48, %v413_v49  ;;  %v545_v51 = vpop.f32.mrb[5].mxu1 }
 0x37b   :  { %v416_v52 = vpop.f32.mrb[6].mxu1 }
 0x37c   :  { %v546_v53 = vpop.f32.mrb[7].mxu1  ;;  %v420_v54 = vsel %vm419_vm3, %v414_v50, -inf }
 0x37d   :  { %421 = vmax.xlane.f32.xlu0 %v420_v54 }
 0x40a   :  { %v422_v55 = vpop.xlane.xlu0 %421 }
 0x40b   :  { %v423_v56 = vsub.f32 %v414_v50, %v422_v55 }
 0x40d   :  { %v424_v57 = vmul.f32 1.442695, %v423_v56 }
 0x40f   :  { %573 = vpow2.f32 %v424_v57 }
 0x419   :  { %v574_v58 = vpop.eup %573 }
 0x41a   :  { %v426_v59 = vsel %vm419_vm3, %v574_v58, 0.0 }
 0x41b   :  { %427 = vadd.xlane.f32.xlu0 %v426_v59 }
 0x4a8   :  { %v428_v60 = vpop.xlane.xlu0 %427 }
 0x4a9   :  { %575 = vrcp.f32 %v428_v60 }
 0x4b3   :  { %v576_v61 = vpop.eup %575 }
 0x4b4   :  { %v430_v62 = vmul.f32 %v576_v61, %v574_v58 }
 0x4b6   :  { %431 = vst.msk [vmem:[%s778_s9] sm:$0xff] %vm419_vm3, %v430_v62 }
 0x4b7   :  { %436 = vsyncpa [#allocation3], 1 }

</bundles_post_ra>
